<compile_context>
chip_gen: v5e
topology: v5e:2x2
jax: 0.10.0
libtpu: 0.0.40
codegen_flags: <defaults>
</compile_context>

<pallas_src>
import jax
import jax.numpy as jnp
from jax.experimental import pallas as pl
from jax.experimental.pallas import tpu as pltpu


def convnet_kernel(w1_ref, b1_ref, w2_ref, b2_ref,   # SMEM conv params
                   wout_ref, bout_ref,               # SMEM linear params
                   x_ref,                            # VMEM (L, TILE_N)
                   o_ref):                           # VMEM (O, TILE_N)
    L = x_ref.shape[0]
    K = L - 2                      # Linear input features (== 8 for this module)
    O = o_ref.shape[0]

    # Hoist SMEM scalars once; JAX does not CSE scalar reads / broadcasts.
    w1_0 = w1_ref[0]
    w1_1 = w1_ref[1]
    b1_0 = b1_ref[0]
    w2_0 = w2_ref[0]
    w2_1 = w2_ref[1]
    b2_0 = b2_ref[0]

    # Rows of x: (1, TILE_N) each. Batch is on the 128-lane axis, so every
    # read / FMA / store below is lane-dense.
    xr = [x_ref[pl.ds(i, 1), :] for i in range(L)]

    # Conv1d #1 (kernel_size=2) + ReLU: adjacent-row VPU FMAs -> L-1 rows.
    l1 = [jnp.maximum(w1_0 * xr[i] + w1_1 * xr[i + 1] + b1_0, 0.0)
          for i in range(L - 1)]

    # Conv1d #2 (kernel_size=2) + ReLU -> L-2 == 8 rows.
    l2 = [jnp.maximum(w2_0 * l1[i] + w2_1 * l1[i + 1] + b2_0, 0.0)
          for i in range(K)]

    # Linear(8, O) as VPU FMAs (K=8 is far too small for the MXU).
    rows = []
    for o in range(O):
        acc = l2[0] * wout_ref[o, 0]
        for k in range(1, K):
            acc = acc + l2[k] * wout_ref[o, k]
        rows.append(acc + bout_ref[o])

    # Single full-tile, lane-dense store.
    o_ref[...] = jnp.concatenate(rows, axis=0)


def conv_network_forward(x, params, *, tile_n=2048):
    """x: (N, 1, L) float32 -> (N, 1, output_size) float32."""
    w1, b1, w2, b2, w_out, b_out = params
    N, C, L = x.shape
    assert C == 1, "module uses a single channel"
    O, K = w_out.shape
    assert K == L - 2, "Linear expects feature dim == L - 2"

    # Lane-dense layout: put batch on the 128-lane (last) axis.
    xT = jnp.transpose(x.reshape(N, L))              # (L, N)

    if N > tile_n:
        blk_n = tile_n                               # multiple of 128
        pad = (-N) % blk_n
        if pad:
            xT = jnp.pad(xT, ((0, 0), (0, pad)))
    else:
        blk_n = N                                    # single block == full dims
        pad = 0
    n_total = N + pad
    grid = (n_total // blk_n,)

    smem = pl.BlockSpec(memory_space=pltpu.MemorySpace.SMEM)

    outT = pl.pallas_call(
        convnet_kernel,
        out_shape=jax.ShapeDtypeStruct((O, n_total), jnp.float32),
        grid=grid,
        in_specs=[smem, smem, smem, smem, smem, smem,          # scalar params
                  pl.BlockSpec((L, blk_n), lambda i: (0, i))],  # x tile
        out_specs=pl.BlockSpec((O, blk_n), lambda i: (0, i)),
        compiler_params=pltpu.CompilerParams(
            dimension_semantics=("parallel",)),                 # megacore batch split
    )(w1, b1, w2, b2, w_out, b_out, xT)

    out = jnp.transpose(outT[:, :N])                 # (N, O)
    return out.reshape(N, 1, O)


def init_params(key, output_size):
    """Deterministic init matching the PyTorch parameter shapes.

    Conv1d(1,1,2): weight (1,1,2) -> stored flat as (2,), bias (1,)
    Linear(8,O):   weight (O,8) (PyTorch layout), bias (O,)
    """
    k1, k2, k3, k4, k5, k6 = jax.random.split(key, 6)
    bound_conv = (1.0 / (1 * 2)) ** 0.5              # PyTorch default bound
    bound_lin = (1.0 / 8) ** 0.5
    w1 = jax.random.uniform(k1, (2,), jnp.float32, -bound_conv, bound_conv)
    b1 = jax.random.uniform(k2, (1,), jnp.float32, -bound_conv, bound_conv)
    w2 = jax.random.uniform(k3, (2,), jnp.float32, -bound_conv, bound_conv)
    b2 = jax.random.uniform(k4, (1,), jnp.float32, -bound_conv, bound_conv)
    w_out = jax.random.uniform(k5, (output_size, 8), jnp.float32,
                               -bound_lin, bound_lin)
    b_out = jax.random.uniform(k6, (output_size,), jnp.float32,
                               -bound_lin, bound_lin)
    return (w1, b1, w2, b2, w_out, b_out)


def reference_forward(x, params):
    """Pure-JAX reference of the PyTorch forward pass (for verification)."""
    w1, b1, w2, b2, w_out, b_out = params
    xs = x[:, 0, :]                                   # (N, L)
    l1 = jnp.maximum(w1[0] * xs[:, :-1] + w1[1] * xs[:, 1:] + b1[0], 0.0)
    l2 = jnp.maximum(w2[0] * l1[:, :-1] + w2[1] * l1[:, 1:] + b2[0], 0.0)
    out = l2 @ w_out.T + b_out
    return out[:, None, :]


if __name__ == "__main__":
    key = jax.random.PRNGKey(0)
    kx, kp, kx2 = jax.random.split(key, 3)

    L = 10            # Linear(8, ...) requires L - 2 == 8
    output_size = 4
    params = init_params(kp, output_size)

    # Small case: single block covering the whole batch.
    x = jax.random.normal(kx, (2, 1, L), dtype=jnp.float32)
    out = jax.block_until_ready(conv_network_forward(x, params))
    ref = reference_forward(x, params)
    assert out.shape == (2, 1, output_size)
    assert jnp.allclose(out, ref, atol=1e-5, rtol=1e-5), "mismatch (small case)"

    # Tiled + padded grid path: 3 lane-tiles of 128 over a batch of 300.
    x2 = jax.random.normal(kx2, (300, 1, L), dtype=jnp.float32)
    out2 = jax.block_until_ready(conv_network_forward(x2, params, tile_n=128))
    ref2 = reference_forward(x2, params)
    assert out2.shape == (300, 1, output_size)
    assert jnp.allclose(out2, ref2, atol=1e-5, rtol=1e-5), "mismatch (tiled case)"

    print("KERNEL_OK")
</pallas_src>

<mosaic_0001>
module attributes {stable_mosaic.version = 11 : i64} {
  func.func @convnet_kernel(%arg0: i32, %arg1: memref<2xf32, #tpu.memory_space<smem>>, %arg2: memref<1xf32, #tpu.memory_space<smem>>, %arg3: memref<2xf32, #tpu.memory_space<smem>>, %arg4: memref<1xf32, #tpu.memory_space<smem>>, %arg5: memref<4x8xf32, #tpu.memory_space<smem>>, %arg6: memref<4xf32, #tpu.memory_space<smem>>, %arg7: memref<10x2xf32, #tpu.memory_space<vmem>>, %arg8: memref<4x2xf32, #tpu.memory_space<vmem>>) attributes {dimension_semantics = [#tpu.dimension_semantics<parallel>], iteration_bounds = array<i64: 1>, scalar_prefetch = 0 : i64, scratch_operands = 0 : i64, tpu.core_type = #tpu.core_type<tc>, window_params = [{transform_indices = @transform_0, window_bounds = array<i64: 2>}, {transform_indices = @transform_1, window_bounds = array<i64: 1>}, {transform_indices = @transform_2, window_bounds = array<i64: 2>}, {transform_indices = @transform_3, window_bounds = array<i64: 1>}, {transform_indices = @transform_4, window_bounds = array<i64: 4, 8>}, {transform_indices = @transform_5, window_bounds = array<i64: 4>}, {transform_indices = @transform_6, window_bounds = array<i64: 10, 2>}, {transform_indices = @transform_7, window_bounds = array<i64: 4, 2>}]} {
    %c0 = arith.constant 0 : index
    %0 = memref.load %arg1[%c0] : memref<2xf32, #tpu.memory_space<smem>>
    %c1 = arith.constant 1 : index
    %1 = memref.load %arg1[%c1] : memref<2xf32, #tpu.memory_space<smem>>
    %c0_0 = arith.constant 0 : index
    %2 = memref.load %arg2[%c0_0] : memref<1xf32, #tpu.memory_space<smem>>
    %c0_1 = arith.constant 0 : index
    %3 = memref.load %arg3[%c0_1] : memref<2xf32, #tpu.memory_space<smem>>
    %c1_2 = arith.constant 1 : index
    %4 = memref.load %arg3[%c1_2] : memref<2xf32, #tpu.memory_space<smem>>
    %c0_3 = arith.constant 0 : index
    %5 = memref.load %arg4[%c0_3] : memref<1xf32, #tpu.memory_space<smem>>
    %c0_4 = arith.constant 0 : index
    %c0_5 = arith.constant 0 : index
    %6 = vector.load %arg7[%c0_4, %c0_5] : memref<10x2xf32, #tpu.memory_space<vmem>>, vector<1x2xf32>
    %c1_6 = arith.constant 1 : index
    %c0_7 = arith.constant 0 : index
    %7 = vector.load %arg7[%c1_6, %c0_7] : memref<10x2xf32, #tpu.memory_space<vmem>>, vector<1x2xf32>
    %c2 = arith.constant 2 : index
    %c0_8 = arith.constant 0 : index
    %8 = vector.load %arg7[%c2, %c0_8] : memref<10x2xf32, #tpu.memory_space<vmem>>, vector<1x2xf32>
    %c3 = arith.constant 3 : index
    %c0_9 = arith.constant 0 : index
    %9 = vector.load %arg7[%c3, %c0_9] : memref<10x2xf32, #tpu.memory_space<vmem>>, vector<1x2xf32>
    %c4 = arith.constant 4 : index
    %c0_10 = arith.constant 0 : index
    %10 = vector.load %arg7[%c4, %c0_10] : memref<10x2xf32, #tpu.memory_space<vmem>>, vector<1x2xf32>
    %c5 = arith.constant 5 : index
    %c0_11 = arith.constant 0 : index
    %11 = vector.load %arg7[%c5, %c0_11] : memref<10x2xf32, #tpu.memory_space<vmem>>, vector<1x2xf32>
    %c6 = arith.constant 6 : index
    %c0_12 = arith.constant 0 : index
    %12 = vector.load %arg7[%c6, %c0_12] : memref<10x2xf32, #tpu.memory_space<vmem>>, vector<1x2xf32>
    %c7 = arith.constant 7 : index
    %c0_13 = arith.constant 0 : index
    %13 = vector.load %arg7[%c7, %c0_13] : memref<10x2xf32, #tpu.memory_space<vmem>>, vector<1x2xf32>
    %c8 = arith.constant 8 : index
    %c0_14 = arith.constant 0 : index
    %14 = vector.load %arg7[%c8, %c0_14] : memref<10x2xf32, #tpu.memory_space<vmem>>, vector<1x2xf32>
    %c9 = arith.constant 9 : index
    %c0_15 = arith.constant 0 : index
    %15 = vector.load %arg7[%c9, %c0_15] : memref<10x2xf32, #tpu.memory_space<vmem>>, vector<1x2xf32>
    %16 = vector.broadcast %0 : f32 to vector<1x2xf32>
    %17 = arith.mulf %16, %6 : vector<1x2xf32>
    %18 = vector.broadcast %1 : f32 to vector<1x2xf32>
    %19 = arith.mulf %18, %7 : vector<1x2xf32>
    %20 = arith.addf %17, %19 : vector<1x2xf32>
    %21 = vector.broadcast %2 : f32 to vector<1x2xf32>
    %22 = arith.addf %20, %21 : vector<1x2xf32>
    %cst = arith.constant 0.000000e+00 : f32
    %23 = vector.broadcast %cst : f32 to vector<1x2xf32>
    %24 = arith.maximumf %22, %23 : vector<1x2xf32>
    %25 = vector.broadcast %0 : f32 to vector<1x2xf32>
    %26 = arith.mulf %25, %7 : vector<1x2xf32>
    %27 = vector.broadcast %1 : f32 to vector<1x2xf32>
    %28 = arith.mulf %27, %8 : vector<1x2xf32>
    %29 = arith.addf %26, %28 : vector<1x2xf32>
    %30 = vector.broadcast %2 : f32 to vector<1x2xf32>
    %31 = arith.addf %29, %30 : vector<1x2xf32>
    %cst_16 = arith.constant 0.000000e+00 : f32
    %32 = vector.broadcast %cst_16 : f32 to vector<1x2xf32>
    %33 = arith.maximumf %31, %32 : vector<1x2xf32>
    %34 = vector.broadcast %0 : f32 to vector<1x2xf32>
    %35 = arith.mulf %34, %8 : vector<1x2xf32>
    %36 = vector.broadcast %1 : f32 to vector<1x2xf32>
    %37 = arith.mulf %36, %9 : vector<1x2xf32>
    %38 = arith.addf %35, %37 : vector<1x2xf32>
    %39 = vector.broadcast %2 : f32 to vector<1x2xf32>
    %40 = arith.addf %38, %39 : vector<1x2xf32>
    %cst_17 = arith.constant 0.000000e+00 : f32
    %41 = vector.broadcast %cst_17 : f32 to vector<1x2xf32>
    %42 = arith.maximumf %40, %41 : vector<1x2xf32>
    %43 = vector.broadcast %0 : f32 to vector<1x2xf32>
    %44 = arith.mulf %43, %9 : vector<1x2xf32>
    %45 = vector.broadcast %1 : f32 to vector<1x2xf32>
    %46 = arith.mulf %45, %10 : vector<1x2xf32>
    %47 = arith.addf %44, %46 : vector<1x2xf32>
    %48 = vector.broadcast %2 : f32 to vector<1x2xf32>
    %49 = arith.addf %47, %48 : vector<1x2xf32>
    %cst_18 = arith.constant 0.000000e+00 : f32
    %50 = vector.broadcast %cst_18 : f32 to vector<1x2xf32>
    %51 = arith.maximumf %49, %50 : vector<1x2xf32>
    %52 = vector.broadcast %0 : f32 to vector<1x2xf32>
    %53 = arith.mulf %52, %10 : vector<1x2xf32>
    %54 = vector.broadcast %1 : f32 to vector<1x2xf32>
    %55 = arith.mulf %54, %11 : vector<1x2xf32>
    %56 = arith.addf %53, %55 : vector<1x2xf32>
    %57 = vector.broadcast %2 : f32 to vector<1x2xf32>
    %58 = arith.addf %56, %57 : vector<1x2xf32>
    %cst_19 = arith.constant 0.000000e+00 : f32
    %59 = vector.broadcast %cst_19 : f32 to vector<1x2xf32>
    %60 = arith.maximumf %58, %59 : vector<1x2xf32>
    %61 = vector.broadcast %0 : f32 to vector<1x2xf32>
    %62 = arith.mulf %61, %11 : vector<1x2xf32>
    %63 = vector.broadcast %1 : f32 to vector<1x2xf32>
    %64 = arith.mulf %63, %12 : vector<1x2xf32>
    %65 = arith.addf %62, %64 : vector<1x2xf32>
    %66 = vector.broadcast %2 : f32 to vector<1x2xf32>
    %67 = arith.addf %65, %66 : vector<1x2xf32>
    %cst_20 = arith.constant 0.000000e+00 : f32
    %68 = vector.broadcast %cst_20 : f32 to vector<1x2xf32>
    %69 = arith.maximumf %67, %68 : vector<1x2xf32>
    %70 = vector.broadcast %0 : f32 to vector<1x2xf32>
    %71 = arith.mulf %70, %12 : vector<1x2xf32>
    %72 = vector.broadcast %1 : f32 to vector<1x2xf32>
    %73 = arith.mulf %72, %13 : vector<1x2xf32>
    %74 = arith.addf %71, %73 : vector<1x2xf32>
    %75 = vector.broadcast %2 : f32 to vector<1x2xf32>
    %76 = arith.addf %74, %75 : vector<1x2xf32>
    %cst_21 = arith.constant 0.000000e+00 : f32
    %77 = vector.broadcast %cst_21 : f32 to vector<1x2xf32>
    %78 = arith.maximumf %76, %77 : vector<1x2xf32>
    %79 = vector.broadcast %0 : f32 to vector<1x2xf32>
    %80 = arith.mulf %79, %13 : vector<1x2xf32>
    %81 = vector.broadcast %1 : f32 to vector<1x2xf32>
    %82 = arith.mulf %81, %14 : vector<1x2xf32>
    %83 = arith.addf %80, %82 : vector<1x2xf32>
    %84 = vector.broadcast %2 : f32 to vector<1x2xf32>
    %85 = arith.addf %83, %84 : vector<1x2xf32>
    %cst_22 = arith.constant 0.000000e+00 : f32
    %86 = vector.broadcast %cst_22 : f32 to vector<1x2xf32>
    %87 = arith.maximumf %85, %86 : vector<1x2xf32>
    %88 = vector.broadcast %0 : f32 to vector<1x2xf32>
    %89 = arith.mulf %88, %14 : vector<1x2xf32>
    %90 = vector.broadcast %1 : f32 to vector<1x2xf32>
    %91 = arith.mulf %90, %15 : vector<1x2xf32>
    %92 = arith.addf %89, %91 : vector<1x2xf32>
    %93 = vector.broadcast %2 : f32 to vector<1x2xf32>
    %94 = arith.addf %92, %93 : vector<1x2xf32>
    %cst_23 = arith.constant 0.000000e+00 : f32
    %95 = vector.broadcast %cst_23 : f32 to vector<1x2xf32>
    %96 = arith.maximumf %94, %95 : vector<1x2xf32>
    %97 = vector.broadcast %3 : f32 to vector<1x2xf32>
    %98 = arith.mulf %97, %24 : vector<1x2xf32>
    %99 = vector.broadcast %4 : f32 to vector<1x2xf32>
    %100 = arith.mulf %99, %33 : vector<1x2xf32>
    %101 = arith.addf %98, %100 : vector<1x2xf32>
    %102 = vector.broadcast %5 : f32 to vector<1x2xf32>
    %103 = arith.addf %101, %102 : vector<1x2xf32>
    %cst_24 = arith.constant 0.000000e+00 : f32
    %104 = vector.broadcast %cst_24 : f32 to vector<1x2xf32>
    %105 = arith.maximumf %103, %104 : vector<1x2xf32>
    %106 = vector.broadcast %3 : f32 to vector<1x2xf32>
    %107 = arith.mulf %106, %33 : vector<1x2xf32>
    %108 = vector.broadcast %4 : f32 to vector<1x2xf32>
    %109 = arith.mulf %108, %42 : vector<1x2xf32>
    %110 = arith.addf %107, %109 : vector<1x2xf32>
    %111 = vector.broadcast %5 : f32 to vector<1x2xf32>
    %112 = arith.addf %110, %111 : vector<1x2xf32>
    %cst_25 = arith.constant 0.000000e+00 : f32
    %113 = vector.broadcast %cst_25 : f32 to vector<1x2xf32>
    %114 = arith.maximumf %112, %113 : vector<1x2xf32>
    %115 = vector.broadcast %3 : f32 to vector<1x2xf32>
    %116 = arith.mulf %115, %42 : vector<1x2xf32>
    %117 = vector.broadcast %4 : f32 to vector<1x2xf32>
    %118 = arith.mulf %117, %51 : vector<1x2xf32>
    %119 = arith.addf %116, %118 : vector<1x2xf32>
    %120 = vector.broadcast %5 : f32 to vector<1x2xf32>
    %121 = arith.addf %119, %120 : vector<1x2xf32>
    %cst_26 = arith.constant 0.000000e+00 : f32
    %122 = vector.broadcast %cst_26 : f32 to vector<1x2xf32>
    %123 = arith.maximumf %121, %122 : vector<1x2xf32>
    %124 = vector.broadcast %3 : f32 to vector<1x2xf32>
    %125 = arith.mulf %124, %51 : vector<1x2xf32>
    %126 = vector.broadcast %4 : f32 to vector<1x2xf32>
    %127 = arith.mulf %126, %60 : vector<1x2xf32>
    %128 = arith.addf %125, %127 : vector<1x2xf32>
    %129 = vector.broadcast %5 : f32 to vector<1x2xf32>
    %130 = arith.addf %128, %129 : vector<1x2xf32>
    %cst_27 = arith.constant 0.000000e+00 : f32
    %131 = vector.broadcast %cst_27 : f32 to vector<1x2xf32>
    %132 = arith.maximumf %130, %131 : vector<1x2xf32>
    %133 = vector.broadcast %3 : f32 to vector<1x2xf32>
    %134 = arith.mulf %133, %60 : vector<1x2xf32>
    %135 = vector.broadcast %4 : f32 to vector<1x2xf32>
    %136 = arith.mulf %135, %69 : vector<1x2xf32>
    %137 = arith.addf %134, %136 : vector<1x2xf32>
    %138 = vector.broadcast %5 : f32 to vector<1x2xf32>
    %139 = arith.addf %137, %138 : vector<1x2xf32>
    %cst_28 = arith.constant 0.000000e+00 : f32
    %140 = vector.broadcast %cst_28 : f32 to vector<1x2xf32>
    %141 = arith.maximumf %139, %140 : vector<1x2xf32>
    %142 = vector.broadcast %3 : f32 to vector<1x2xf32>
    %143 = arith.mulf %142, %69 : vector<1x2xf32>
    %144 = vector.broadcast %4 : f32 to vector<1x2xf32>
    %145 = arith.mulf %144, %78 : vector<1x2xf32>
    %146 = arith.addf %143, %145 : vector<1x2xf32>
    %147 = vector.broadcast %5 : f32 to vector<1x2xf32>
    %148 = arith.addf %146, %147 : vector<1x2xf32>
    %cst_29 = arith.constant 0.000000e+00 : f32
    %149 = vector.broadcast %cst_29 : f32 to vector<1x2xf32>
    %150 = arith.maximumf %148, %149 : vector<1x2xf32>
    %151 = vector.broadcast %3 : f32 to vector<1x2xf32>
    %152 = arith.mulf %151, %78 : vector<1x2xf32>
    %153 = vector.broadcast %4 : f32 to vector<1x2xf32>
    %154 = arith.mulf %153, %87 : vector<1x2xf32>
    %155 = arith.addf %152, %154 : vector<1x2xf32>
    %156 = vector.broadcast %5 : f32 to vector<1x2xf32>
    %157 = arith.addf %155, %156 : vector<1x2xf32>
    %cst_30 = arith.constant 0.000000e+00 : f32
    %158 = vector.broadcast %cst_30 : f32 to vector<1x2xf32>
    %159 = arith.maximumf %157, %158 : vector<1x2xf32>
    %160 = vector.broadcast %3 : f32 to vector<1x2xf32>
    %161 = arith.mulf %160, %87 : vector<1x2xf32>
    %162 = vector.broadcast %4 : f32 to vector<1x2xf32>
    %163 = arith.mulf %162, %96 : vector<1x2xf32>
    %164 = arith.addf %161, %163 : vector<1x2xf32>
    %165 = vector.broadcast %5 : f32 to vector<1x2xf32>
    %166 = arith.addf %164, %165 : vector<1x2xf32>
    %cst_31 = arith.constant 0.000000e+00 : f32
    %167 = vector.broadcast %cst_31 : f32 to vector<1x2xf32>
    %168 = arith.maximumf %166, %167 : vector<1x2xf32>
    %c0_32 = arith.constant 0 : index
    %c0_33 = arith.constant 0 : index
    %169 = memref.load %arg5[%c0_32, %c0_33] : memref<4x8xf32, #tpu.memory_space<smem>>
    %170 = vector.broadcast %169 : f32 to vector<1x2xf32>
    %171 = arith.mulf %105, %170 : vector<1x2xf32>
    %c0_34 = arith.constant 0 : index
    %c1_35 = arith.constant 1 : index
    %172 = memref.load %arg5[%c0_34, %c1_35] : memref<4x8xf32, #tpu.memory_space<smem>>
    %173 = vector.broadcast %172 : f32 to vector<1x2xf32>
    %174 = arith.mulf %114, %173 : vector<1x2xf32>
    %175 = arith.addf %171, %174 : vector<1x2xf32>
    %c0_36 = arith.constant 0 : index
    %c2_37 = arith.constant 2 : index
    %176 = memref.load %arg5[%c0_36, %c2_37] : memref<4x8xf32, #tpu.memory_space<smem>>
    %177 = vector.broadcast %176 : f32 to vector<1x2xf32>
    %178 = arith.mulf %123, %177 : vector<1x2xf32>
    %179 = arith.addf %175, %178 : vector<1x2xf32>
    %c0_38 = arith.constant 0 : index
    %c3_39 = arith.constant 3 : index
    %180 = memref.load %arg5[%c0_38, %c3_39] : memref<4x8xf32, #tpu.memory_space<smem>>
    %181 = vector.broadcast %180 : f32 to vector<1x2xf32>
    %182 = arith.mulf %132, %181 : vector<1x2xf32>
    %183 = arith.addf %179, %182 : vector<1x2xf32>
    %c0_40 = arith.constant 0 : index
    %c4_41 = arith.constant 4 : index
    %184 = memref.load %arg5[%c0_40, %c4_41] : memref<4x8xf32, #tpu.memory_space<smem>>
    %185 = vector.broadcast %184 : f32 to vector<1x2xf32>
    %186 = arith.mulf %141, %185 : vector<1x2xf32>
    %187 = arith.addf %183, %186 : vector<1x2xf32>
    %c0_42 = arith.constant 0 : index
    %c5_43 = arith.constant 5 : index
    %188 = memref.load %arg5[%c0_42, %c5_43] : memref<4x8xf32, #tpu.memory_space<smem>>
    %189 = vector.broadcast %188 : f32 to vector<1x2xf32>
    %190 = arith.mulf %150, %189 : vector<1x2xf32>
    %191 = arith.addf %187, %190 : vector<1x2xf32>
    %c0_44 = arith.constant 0 : index
    %c6_45 = arith.constant 6 : index
    %192 = memref.load %arg5[%c0_44, %c6_45] : memref<4x8xf32, #tpu.memory_space<smem>>
    %193 = vector.broadcast %192 : f32 to vector<1x2xf32>
    %194 = arith.mulf %159, %193 : vector<1x2xf32>
    %195 = arith.addf %191, %194 : vector<1x2xf32>
    %c0_46 = arith.constant 0 : index
    %c7_47 = arith.constant 7 : index
    %196 = memref.load %arg5[%c0_46, %c7_47] : memref<4x8xf32, #tpu.memory_space<smem>>
    %197 = vector.broadcast %196 : f32 to vector<1x2xf32>
    %198 = arith.mulf %168, %197 : vector<1x2xf32>
    %199 = arith.addf %195, %198 : vector<1x2xf32>
    %c0_48 = arith.constant 0 : index
    %200 = memref.load %arg6[%c0_48] : memref<4xf32, #tpu.memory_space<smem>>
    %201 = vector.broadcast %200 : f32 to vector<1x2xf32>
    %202 = arith.addf %199, %201 : vector<1x2xf32>
    %c1_49 = arith.constant 1 : index
    %c0_50 = arith.constant 0 : index
    %203 = memref.load %arg5[%c1_49, %c0_50] : memref<4x8xf32, #tpu.memory_space<smem>>
    %204 = vector.broadcast %203 : f32 to vector<1x2xf32>
    %205 = arith.mulf %105, %204 : vector<1x2xf32>
    %c1_51 = arith.constant 1 : index
    %c1_52 = arith.constant 1 : index
    %206 = memref.load %arg5[%c1_51, %c1_52] : memref<4x8xf32, #tpu.memory_space<smem>>
    %207 = vector.broadcast %206 : f32 to vector<1x2xf32>
    %208 = arith.mulf %114, %207 : vector<1x2xf32>
    %209 = arith.addf %205, %208 : vector<1x2xf32>
    %c1_53 = arith.constant 1 : index
    %c2_54 = arith.constant 2 : index
    %210 = memref.load %arg5[%c1_53, %c2_54] : memref<4x8xf32, #tpu.memory_space<smem>>
    %211 = vector.broadcast %210 : f32 to vector<1x2xf32>
    %212 = arith.mulf %123, %211 : vector<1x2xf32>
    %213 = arith.addf %209, %212 : vector<1x2xf32>
    %c1_55 = arith.constant 1 : index
    %c3_56 = arith.constant 3 : index
    %214 = memref.load %arg5[%c1_55, %c3_56] : memref<4x8xf32, #tpu.memory_space<smem>>
    %215 = vector.broadcast %214 : f32 to vector<1x2xf32>
    %216 = arith.mulf %132, %215 : vector<1x2xf32>
    %217 = arith.addf %213, %216 : vector<1x2xf32>
    %c1_57 = arith.constant 1 : index
    %c4_58 = arith.constant 4 : index
    %218 = memref.load %arg5[%c1_57, %c4_58] : memref<4x8xf32, #tpu.memory_space<smem>>
    %219 = vector.broadcast %218 : f32 to vector<1x2xf32>
    %220 = arith.mulf %141, %219 : vector<1x2xf32>
    %221 = arith.addf %217, %220 : vector<1x2xf32>
    %c1_59 = arith.constant 1 : index
    %c5_60 = arith.constant 5 : index
    %222 = memref.load %arg5[%c1_59, %c5_60] : memref<4x8xf32, #tpu.memory_space<smem>>
    %223 = vector.broadcast %222 : f32 to vector<1x2xf32>
    %224 = arith.mulf %150, %223 : vector<1x2xf32>
    %225 = arith.addf %221, %224 : vector<1x2xf32>
    %c1_61 = arith.constant 1 : index
    %c6_62 = arith.constant 6 : index
    %226 = memref.load %arg5[%c1_61, %c6_62] : memref<4x8xf32, #tpu.memory_space<smem>>
    %227 = vector.broadcast %226 : f32 to vector<1x2xf32>
    %228 = arith.mulf %159, %227 : vector<1x2xf32>
    %229 = arith.addf %225, %228 : vector<1x2xf32>
    %c1_63 = arith.constant 1 : index
    %c7_64 = arith.constant 7 : index
    %230 = memref.load %arg5[%c1_63, %c7_64] : memref<4x8xf32, #tpu.memory_space<smem>>
    %231 = vector.broadcast %230 : f32 to vector<1x2xf32>
    %232 = arith.mulf %168, %231 : vector<1x2xf32>
    %233 = arith.addf %229, %232 : vector<1x2xf32>
    %c1_65 = arith.constant 1 : index
    %234 = memref.load %arg6[%c1_65] : memref<4xf32, #tpu.memory_space<smem>>
    %235 = vector.broadcast %234 : f32 to vector<1x2xf32>
    %236 = arith.addf %233, %235 : vector<1x2xf32>
    %c2_66 = arith.constant 2 : index
    %c0_67 = arith.constant 0 : index
    %237 = memref.load %arg5[%c2_66, %c0_67] : memref<4x8xf32, #tpu.memory_space<smem>>
    %238 = vector.broadcast %237 : f32 to vector<1x2xf32>
    %239 = arith.mulf %105, %238 : vector<1x2xf32>
    %c2_68 = arith.constant 2 : index
    %c1_69 = arith.constant 1 : index
    %240 = memref.load %arg5[%c2_68, %c1_69] : memref<4x8xf32, #tpu.memory_space<smem>>
    %241 = vector.broadcast %240 : f32 to vector<1x2xf32>
    %242 = arith.mulf %114, %241 : vector<1x2xf32>
    %243 = arith.addf %239, %242 : vector<1x2xf32>
    %c2_70 = arith.constant 2 : index
    %c2_71 = arith.constant 2 : index
    %244 = memref.load %arg5[%c2_70, %c2_71] : memref<4x8xf32, #tpu.memory_space<smem>>
    %245 = vector.broadcast %244 : f32 to vector<1x2xf32>
    %246 = arith.mulf %123, %245 : vector<1x2xf32>
    %247 = arith.addf %243, %246 : vector<1x2xf32>
    %c2_72 = arith.constant 2 : index
    %c3_73 = arith.constant 3 : index
    %248 = memref.load %arg5[%c2_72, %c3_73] : memref<4x8xf32, #tpu.memory_space<smem>>
    %249 = vector.broadcast %248 : f32 to vector<1x2xf32>
    %250 = arith.mulf %132, %249 : vector<1x2xf32>
    %251 = arith.addf %247, %250 : vector<1x2xf32>
    %c2_74 = arith.constant 2 : index
    %c4_75 = arith.constant 4 : index
    %252 = memref.load %arg5[%c2_74, %c4_75] : memref<4x8xf32, #tpu.memory_space<smem>>
    %253 = vector.broadcast %252 : f32 to vector<1x2xf32>
    %254 = arith.mulf %141, %253 : vector<1x2xf32>
    %255 = arith.addf %251, %254 : vector<1x2xf32>
    %c2_76 = arith.constant 2 : index
    %c5_77 = arith.constant 5 : index
    %256 = memref.load %arg5[%c2_76, %c5_77] : memref<4x8xf32, #tpu.memory_space<smem>>
    %257 = vector.broadcast %256 : f32 to vector<1x2xf32>
    %258 = arith.mulf %150, %257 : vector<1x2xf32>
    %259 = arith.addf %255, %258 : vector<1x2xf32>
    %c2_78 = arith.constant 2 : index
    %c6_79 = arith.constant 6 : index
    %260 = memref.load %arg5[%c2_78, %c6_79] : memref<4x8xf32, #tpu.memory_space<smem>>
    %261 = vector.broadcast %260 : f32 to vector<1x2xf32>
    %262 = arith.mulf %159, %261 : vector<1x2xf32>
    %263 = arith.addf %259, %262 : vector<1x2xf32>
    %c2_80 = arith.constant 2 : index
    %c7_81 = arith.constant 7 : index
    %264 = memref.load %arg5[%c2_80, %c7_81] : memref<4x8xf32, #tpu.memory_space<smem>>
    %265 = vector.broadcast %264 : f32 to vector<1x2xf32>
    %266 = arith.mulf %168, %265 : vector<1x2xf32>
    %267 = arith.addf %263, %266 : vector<1x2xf32>
    %c2_82 = arith.constant 2 : index
    %268 = memref.load %arg6[%c2_82] : memref<4xf32, #tpu.memory_space<smem>>
    %269 = vector.broadcast %268 : f32 to vector<1x2xf32>
    %270 = arith.addf %267, %269 : vector<1x2xf32>
    %c3_83 = arith.constant 3 : index
    %c0_84 = arith.constant 0 : index
    %271 = memref.load %arg5[%c3_83, %c0_84] : memref<4x8xf32, #tpu.memory_space<smem>>
    %272 = vector.broadcast %271 : f32 to vector<1x2xf32>
    %273 = arith.mulf %105, %272 : vector<1x2xf32>
    %c3_85 = arith.constant 3 : index
    %c1_86 = arith.constant 1 : index
    %274 = memref.load %arg5[%c3_85, %c1_86] : memref<4x8xf32, #tpu.memory_space<smem>>
    %275 = vector.broadcast %274 : f32 to vector<1x2xf32>
    %276 = arith.mulf %114, %275 : vector<1x2xf32>
    %277 = arith.addf %273, %276 : vector<1x2xf32>
    %c3_87 = arith.constant 3 : index
    %c2_88 = arith.constant 2 : index
    %278 = memref.load %arg5[%c3_87, %c2_88] : memref<4x8xf32, #tpu.memory_space<smem>>
    %279 = vector.broadcast %278 : f32 to vector<1x2xf32>
    %280 = arith.mulf %123, %279 : vector<1x2xf32>
    %281 = arith.addf %277, %280 : vector<1x2xf32>
    %c3_89 = arith.constant 3 : index
    %c3_90 = arith.constant 3 : index
    %282 = memref.load %arg5[%c3_89, %c3_90] : memref<4x8xf32, #tpu.memory_space<smem>>
    %283 = vector.broadcast %282 : f32 to vector<1x2xf32>
    %284 = arith.mulf %132, %283 : vector<1x2xf32>
    %285 = arith.addf %281, %284 : vector<1x2xf32>
    %c3_91 = arith.constant 3 : index
    %c4_92 = arith.constant 4 : index
    %286 = memref.load %arg5[%c3_91, %c4_92] : memref<4x8xf32, #tpu.memory_space<smem>>
    %287 = vector.broadcast %286 : f32 to vector<1x2xf32>
    %288 = arith.mulf %141, %287 : vector<1x2xf32>
    %289 = arith.addf %285, %288 : vector<1x2xf32>
    %c3_93 = arith.constant 3 : index
    %c5_94 = arith.constant 5 : index
    %290 = memref.load %arg5[%c3_93, %c5_94] : memref<4x8xf32, #tpu.memory_space<smem>>
    %291 = vector.broadcast %290 : f32 to vector<1x2xf32>
    %292 = arith.mulf %150, %291 : vector<1x2xf32>
    %293 = arith.addf %289, %292 : vector<1x2xf32>
    %c3_95 = arith.constant 3 : index
    %c6_96 = arith.constant 6 : index
    %294 = memref.load %arg5[%c3_95, %c6_96] : memref<4x8xf32, #tpu.memory_space<smem>>
    %295 = vector.broadcast %294 : f32 to vector<1x2xf32>
    %296 = arith.mulf %159, %295 : vector<1x2xf32>
    %297 = arith.addf %293, %296 : vector<1x2xf32>
    %c3_97 = arith.constant 3 : index
    %c7_98 = arith.constant 7 : index
    %298 = memref.load %arg5[%c3_97, %c7_98] : memref<4x8xf32, #tpu.memory_space<smem>>
    %299 = vector.broadcast %298 : f32 to vector<1x2xf32>
    %300 = arith.mulf %168, %299 : vector<1x2xf32>
    %301 = arith.addf %297, %300 : vector<1x2xf32>
    %c3_99 = arith.constant 3 : index
    %302 = memref.load %arg6[%c3_99] : memref<4xf32, #tpu.memory_space<smem>>
    %303 = vector.broadcast %302 : f32 to vector<1x2xf32>
    %304 = arith.addf %301, %303 : vector<1x2xf32>
    %305 = tpu.concatenate %202, %236, %270, %304 in 0 : vector<1x2xf32>, vector<1x2xf32>, vector<1x2xf32>, vector<1x2xf32> -> vector<4x2xf32>
    %c0_100 = arith.constant 0 : index
    %c0_101 = arith.constant 0 : index
    %306 = vector.load %arg8[%c0_100, %c0_101] : memref<4x2xf32, #tpu.memory_space<vmem>>, vector<4x2xf32>
    tpu.vector_store %arg8[%c0_100, %c0_101], %305 {strides = array<i32>} : memref<4x2xf32, #tpu.memory_space<vmem>>, vector<4x2xf32>,
    return
  }
  func.func @transform_0(%arg0: i32) -> i32 {
    %c0_i32 = arith.constant 0 : i32
    %c0_i32_0 = arith.constant 0 : i32
    return %c0_i32 : i32
  }
  func.func @transform_1(%arg0: i32) -> i32 {
    %c0_i32 = arith.constant 0 : i32
    %c0_i32_0 = arith.constant 0 : i32
    return %c0_i32 : i32
  }
  func.func @transform_2(%arg0: i32) -> i32 {
    %c0_i32 = arith.constant 0 : i32
    %c0_i32_0 = arith.constant 0 : i32
    return %c0_i32 : i32
  }
  func.func @transform_3(%arg0: i32) -> i32 {
    %c0_i32 = arith.constant 0 : i32
    %c0_i32_0 = arith.constant 0 : i32
    return %c0_i32 : i32
  }
  func.func @transform_4(%arg0: i32) -> (i32, i32) {
    %c0_i32 = arith.constant 0 : i32
    %c0_i32_0 = arith.constant 0 : i32
    %c0_i32_1 = arith.constant 0 : i32
    return %c0_i32, %c0_i32_0 : i32, i32
  }
  func.func @transform_5(%arg0: i32) -> i32 {
    %c0_i32 = arith.constant 0 : i32
    %c0_i32_0 = arith.constant 0 : i32
    return %c0_i32 : i32
  }
  func.func @transform_6(%arg0: i32) -> (i32, i32) {
    %c0_i32 = arith.constant 0 : i32
    %c0_i32_0 = arith.constant 0 : i32
    return %c0_i32, %arg0 : i32, i32
  }
  func.func @transform_7(%arg0: i32) -> (i32, i32) {
    %c0_i32 = arith.constant 0 : i32
    %c0_i32_0 = arith.constant 0 : i32
    return %c0_i32, %arg0 : i32, i32
  }
}

</mosaic_0001>

<bundles_post_ra>
// kernel: tpu_custom_call.1
= control target key start
LH: loop header
LB: loop body
LE: loop exit
PB: predicated region body
PF: predicated region fallthrough
CT: control target
= control target key end

     0   :  { %14 = vsyncpa [#allocation5], 0  ;;  %s712_s0 = inlined_call_operand.vmem [shape: f32[2], index: 0, kind: input, shape index: {}]   ;;  %s713_s1 = inlined_call_operand.<no memory space> [shape: f32[1], index: 1, kind: input, shape index: {}]   ;;  %s714_s2 = inlined_call_operand.vmem [shape: f32[2], index: 2, kind: input, shape index: {}]   ;;  %s715_s3 = inlined_call_operand.<no memory space> [shape: f32[1], index: 3, kind: input, shape index: {}]   ;;  %s716_s4 = inlined_call_operand.vmem [shape: f32[4,8], index: 4, kind: input, shape index: {}]   ;;  %s717_s5 = inlined_call_operand.vmem [shape: f32[4], index: 5, kind: input, shape index: {}]   ;;  %s718_s6 = inlined_call_operand.vmem [shape: f32[10,2], index: 6, kind: input, shape index: {}]   ;;  %s719_s7 = inlined_call_operand.vmem [shape: f32[4,2], index: 7, kind: output, shape index: {}]  }
   0x1   :  { %15 = vsyncpa [#allocation7], 0  ;;  %s33_s26 = sshll.u32 %s714_s2, 4  ;;  %s34_s26 = int_to_ptr.vmem [resolvable:$true] %s33_s26 }
   0x2   :  { %16 = vsyncpa [#allocation10], 0  ;;  %s22_s29 = sshll.u32 %s712_s0, 4  ;;  %s437_s30 = smov [#allocation6]   ;;  %s23_s29 = int_to_ptr.vmem [resolvable:$true] %s22_s29 }
   0x3   :  { %36 = dma.vmem_to_smem %s34_s26, 16, %s437_s30, [#allocation7]  }
   0x4   :  { %s438_s8 = smov [#allocation4]   ;;  %s44_s11 = sshll.u32 %s716_s4, 4  ;;  %s45_s11 = int_to_ptr.vmem [resolvable:$true] %s44_s11 }
   0x5   :  { %25 = dma.vmem_to_smem %s23_s29, 16, %s438_s8, [#allocation5]  }
   0x6   :  { %s53_s2 = sshll.u32 %s717_s5, 4  ;;  %s439_s14 = smov [#allocation8]   ;;  %s54_s2 = int_to_ptr.vmem [resolvable:$true] %s53_s2 }
   0x7   :  { %47 = dma.vmem_to_smem %s45_s11, 64, %s439_s14, [#allocation7]  }
   0x8   :  { %s440_s15 = smov [#allocation9]  }
   0x9   :  { %56 = dma.vmem_to_smem %s54_s2, 16, %s440_s15, [#allocation10]  }
   0xa   :  { %431 = dma.done.wait [#allocation5], 16  }
   0xb   :  { %432 = vsyncadd [#allocation5], 4294967280 }
   0xc   :  { %433 = dma.done.wait [#allocation7], 80  }
   0xd   :  { %434 = vsyncadd [#allocation7], 4294967216 }
   0xe   :  { %435 = dma.done.wait [#allocation10], 16  }
   0xf   :  { %436 = vsyncadd [#allocation10], 4294967280 }
  0x10   :  { %75 = sfence }
  0x11   :  { %s76_s0 = sld [smem:[#allocation4]]  ;;  %v82_v0 = vld [vmem:[%s718_s6] sm:$0x1]  ;;  %v83_v1 = vld [vmem:[%s718_s6 + $0x1] sm:$0x1]  ;;  %v508_v4 = vstv %s713_s1  ;;  %v519_v8 = vstv %s715_s3  ;;  %vm328_vm0 = vcmask 1040384  }
  0x12   :  { %s343_s16 = sld [smem:[#allocation4 + $0x1]]  ;;  %v84_v2 = vld [vmem:[%s718_s6 + $0x2] sm:$0x1]  ;;  %v85_v3 = vld [vmem:[%s718_s6 + $0x3] sm:$0x1]  ;;  %vm330_vm1 = vcmask 1041408  }
  0x13   :  { %v86_v5 = vld [vmem:[%s718_s6 + $0x4] sm:$0x1]  ;;  %v87_v6 = vld [vmem:[%s718_s6 + $0x5] sm:$0x1]  ;;  %v88_v9 = vld [vmem:[%s718_s6 + $0x6] sm:$0x1] }
  0x14   :  { %s524_s1 = sld [smem:[#allocation6]]  ;;  %v89_v14 = vld [vmem:[%s718_s6 + $0x7] sm:$0x1]  ;;  %v90_v31 = vld [vmem:[%s718_s6 + $0x8] sm:$0x1]  ;;  %vm332_vm2 = vcmask 1042432  }
  0x15   :  { %s529_s3 = sld [smem:[#allocation6 + $0x1]]  ;;  %v91_v36 = vld [vmem:[%s718_s6 + $0x9] sm:$0x1]  ;;  %vm334_vm3 = vcmask 11264  }
  0x16   :  { %s531_s12 = sld [smem:[#allocation8]] }
  0x17   :  { %v92_v7 = vstv %s76_s0  ;;  %s539_s14 = sld [smem:[#allocation8 + $0x1]] }
  0x18   :  { %v93_v10 = vmul.f32 %v92_v7, %v82_v0  ;;  %v94_v11 = vstv %s343_s16  ;;  %v100_v12 = vmul.f32 %v92_v7, %v83_v1  ;;  %v105_v13 = vmul.f32 %v92_v7, %v84_v2  ;;  %s546_s16 = sld [smem:[#allocation8 + $0x2]] }
  0x19   :  { %v95_v15 = vmul.f32 %v94_v11, %v83_v1  ;;  %v101_v16 = vmul.f32 %v94_v11, %v84_v2  ;;  %v106_v17 = vmul.f32 %v94_v11, %v85_v3  ;;  %v110_v18 = vmul.f32 %v92_v7, %v85_v3  ;;  %s549_s4 = sld [smem:[#allocation8 + $0x3]] }
  0x1a   :  { %v111_v19 = vmul.f32 %v94_v11, %v86_v5  ;;  %v115_v20 = vmul.f32 %v92_v7, %v86_v5  ;;  %v116_v21 = vmul.f32 %v94_v11, %v87_v6  ;;  %v120_v22 = vmul.f32 %v92_v7, %v87_v6  ;;  %s552_s6 = sld [smem:[#allocation8 + $0x4]] }
  0x1b   :  { %v96_v23 = vadd.f32 %v95_v15, %v93_v10  ;;  %v102_v24 = vadd.f32 %v101_v16, %v100_v12  ;;  %v107_v25 = vadd.f32 %v106_v17, %v105_v13  ;;  %v121_v26 = vmul.f32 %v94_v11, %v88_v9  ;;  %s555_s17 = sld [smem:[#allocation8 + $0x5]] }
  0x1c   :  { %v112_v27 = vadd.f32 %v111_v19, %v110_v18  ;;  %v117_v28 = vadd.f32 %v116_v21, %v115_v20  ;;  %v125_v29 = vmul.f32 %v92_v7, %v88_v9  ;;  %v126_v30 = vmul.f32 %v94_v11, %v89_v14  ;;  %s558_s18 = sld [smem:[#allocation8 + $0x6]] }
  0x1d   :  { %v98_v32 = vadd.f32 %v508_v4, %v96_v23  ;;  %v103_v33 = vadd.f32 %v102_v24, %v508_v4  ;;  %v108_v34 = vadd.f32 %v107_v25, %v508_v4  ;;  %v122_v35 = vadd.f32 %v121_v26, %v120_v22  ;;  %s560_s5 = sld [smem:[#allocation8 + $0x7]] }
  0x1e   :  { %v113_v37 = vadd.f32 %v112_v27, %v508_v4  ;;  %v118_v38 = vadd.f32 %v117_v28, %v508_v4  ;;  %v127_v39 = vadd.f32 %v126_v30, %v125_v29  ;;  %v130_v40 = vmul.f32 %v92_v7, %v89_v14  ;;  %s563_s19 = sld [smem:[#allocation8 + $0x80]] }
  0x1f   :  { %v99_v41 = vmax.f32 %v98_v32, 0.0  ;;  %v104_v42 = vmax.f32 %v103_v33, 0.0  ;;  %v109_v43 = vmax.f32 %v108_v34, 0.0  ;;  %v123_v44 = vadd.f32 %v122_v35, %v508_v4  ;;  %s566_s20 = sld [smem:[#allocation8 + $0x81]] }
  0x20   :  { %v114_v45 = vmax.f32 %v113_v37, 0.0  ;;  %v119_v46 = vmax.f32 %v118_v38, 0.0  ;;  %v128_v47 = vadd.f32 %v127_v39, %v508_v4  ;;  %v131_v48 = vmul.f32 %v94_v11, %v90_v31  ;;  %s568_s21 = sld [smem:[#allocation8 + $0x82]] }
  0x21   :  { %v124_v49 = vmax.f32 %v123_v44, 0.0  ;;  %v135_v50 = vmul.f32 %v92_v7, %v90_v31  ;;  %v136_v51 = vmul.f32 %v94_v11, %v91_v36  ;;  %v140_v52 = vstv %s524_s1  ;;  %s572_s22 = sld [smem:[#allocation8 + $0x83]] }
  0x22   :  { %v129_v53 = vmax.f32 %v128_v47, 0.0  ;;  %v132_v54 = vadd.f32 %v131_v48, %v130_v40  ;;  %v141_v55 = vmul.f32 %v140_v52, %v99_v41  ;;  %v142_v56 = vstv %s529_s3  ;;  %s575_s23 = sld [smem:[#allocation8 + $0x84]] }
  0x23   :  { %v137_v57 = vadd.f32 %v136_v51, %v135_v50  ;;  %v143_v58 = vmul.f32 %v142_v56, %v104_v42  ;;  %v148_v59 = vmul.f32 %v140_v52, %v104_v42  ;;  %v149_v60 = vmul.f32 %v142_v56, %v109_v43  ;;  %s579_s24 = sld [smem:[#allocation8 + $0x85]] }
  0x24   :  { %v133_v61 = vadd.f32 %v132_v54, %v508_v4  ;;  %v153_v62 = vmul.f32 %v140_v52, %v109_v43  ;;  %v154_v63 = vmul.f32 %v142_v56, %v114_v45  ;;  %v158_v0 = vmul.f32 %v140_v52, %v114_v45  ;;  %s584_s25 = sld [smem:[#allocation8 + $0x86]] }
  0x25   :  { %v138_v1 = vadd.f32 %v137_v57, %v508_v4  ;;  %v144_v2 = vadd.f32 %v143_v58, %v141_v55  ;;  %v150_v3 = vadd.f32 %v149_v60, %v148_v59  ;;  %v159_v5 = vmul.f32 %v142_v56, %v119_v46  ;;  %s588_s26 = sld [smem:[#allocation8 + $0x87]] }
  0x26   :  { %v134_v6 = vmax.f32 %v133_v61, 0.0  ;;  %v155_v7 = vadd.f32 %v154_v63, %v153_v62  ;;  %v163_v9 = vmul.f32 %v140_v52, %v119_v46  ;;  %v164_v10 = vmul.f32 %v142_v56, %v124_v49  ;;  %s594_s27 = sld [smem:[#allocation8 + $0x100]] }
  0x27   :  { %v139_v11 = vmax.f32 %v138_v1, 0.0  ;;  %v146_v12 = vadd.f32 %v519_v8, %v144_v2  ;;  %v151_v13 = vadd.f32 %v150_v3, %v519_v8  ;;  %v160_v14 = vadd.f32 %v159_v5, %v158_v0  ;;  %s599_s28 = sld [smem:[#allocation8 + $0x101]] }
  0x28   :  { %v156_v4 = vadd.f32 %v155_v7, %v519_v8  ;;  %v165_v15 = vadd.f32 %v164_v10, %v163_v9  ;;  %v168_v16 = vmul.f32 %v140_v52, %v124_v49  ;;  %v169_v17 = vmul.f32 %v142_v56, %v129_v53  ;;  %s606_s29 = sld [smem:[#allocation8 + $0x102]] }
  0x29   :  { %v577_v18 = vmax.f32 %v146_v12, 0.0  ;;  %v173_v19 = vmul.f32 %v140_v52, %v129_v53  ;;  %v581_v20 = vmax.f32 %v151_v13, 0.0  ;;  %v161_v21 = vadd.f32 %v160_v14, %v519_v8  ;;  %s612_s30 = sld [smem:[#allocation8 + $0x103]] }
  0x2a   :  { %v170_v22 = vadd.f32 %v169_v17, %v168_v16  ;;  %v174_v23 = vmul.f32 %v142_v56, %v134_v6  ;;  %v166_v24 = vadd.f32 %v165_v15, %v519_v8  ;;  %v178_v25 = vmul.f32 %v140_v52, %v134_v6  ;;  %s617_s8 = sld [smem:[#allocation8 + $0x104]] }
  0x2b   :  { %v179_v26 = vmul.f32 %v142_v56, %v139_v11  ;;  %v184_v27 = vstv %s531_s12  ;;  %v590_v28 = vmax.f32 %v156_v4, 0.0  ;;  %v187_v33 = vstv %s539_s14  ;;  %s623_s9 = sld [smem:[#allocation8 + $0x105]] }
  0x2c   :  { %v171_v29 = vadd.f32 %v170_v22, %v519_v8  ;;  %v175_v30 = vadd.f32 %v174_v23, %v173_v19  ;;  %v185_v31 = vmul.f32 %v184_v27, %v577_v18  ;;  %v191_v34 = vstv %s546_s16  ;;  %s628_s1 = sld [smem:[#allocation8 + $0x106]] }
  0x2d   :  { %v180_v32 = vadd.f32 %v179_v26, %v178_v25  ;;  %v195_v35 = vstv %s549_s4  ;;  %v601_v36 = vmax.f32 %v161_v21, 0.0  ;;  %v188_v38 = vmul.f32 %v187_v33, %v581_v20  ;;  %s634_s10 = sld [smem:[#allocation8 + $0x107]] }
  0x2e   :  { %v176_v37 = vadd.f32 %v175_v30, %v519_v8  ;;  %v192_v39 = vmul.f32 %v191_v34, %v590_v28  ;;  %v608_v40 = vmax.f32 %v166_v24, 0.0  ;;  %v199_v41 = vstv %s552_s6  ;;  %s639_s11 = sld [smem:[#allocation8 + $0x180]] }
  0x2f   :  { %v203_v42 = vstv %s555_s17  ;;  %v614_v43 = vmax.f32 %v171_v29, 0.0  ;;  %v189_v44 = vadd.f32 %v188_v38, %v185_v31  ;;  %v196_v45 = vmul.f32 %v195_v35, %v601_v36  ;;  %s645_s3 = sld [smem:[#allocation8 + $0x181]] }
  0x30   :  { %v619_v46 = vmax.f32 %v176_v37, 0.0  ;;  %v181_v47 = vadd.f32 %v180_v32, %v519_v8  ;;  %v200_v48 = vmul.f32 %v199_v41, %v608_v40  ;;  %v218_v51 = vstv %s563_s19  ;;  %s650_s12 = sld [smem:[#allocation8 + $0x182]] }
  0x31   :  { %v193_v49 = vadd.f32 %v192_v39, %v189_v44  ;;  %v204_v50 = vmul.f32 %v203_v42, %v614_v43  ;;  %v221_v52 = vstv %s566_s20  ;;  %v207_v53 = vstv %s558_s18  ;;  %s655_s13 = sld [smem:[#allocation8 + $0x183]] }
  0x32   :  { %v219_v54 = vmul.f32 %v218_v51, %v577_v18  ;;  %v222_v55 = vmul.f32 %v221_v52, %v581_v20  ;;  %v225_v8 = vstv %s568_s21  ;;  %v229_v58 = vstv %s572_s22  ;;  %s660_s2 = sld [smem:[#allocation8 + $0x184]] }
  0x33   :  { %v197_v56 = vadd.f32 %v196_v45, %v193_v49  ;;  %v226_v57 = vmul.f32 %v225_v8, %v590_v28  ;;  %v233_v59 = vstv %s575_s23  ;;  %v641_v60 = vmax.f32 %v181_v47, 0.0  ;;  %s662_s14 = sld [smem:[#allocation9 + $0x1]] }
  0x34   :  { %v223_v61 = vadd.f32 %v222_v55, %v219_v54  ;;  %v230_v62 = vmul.f32 %v229_v58, %v601_v36  ;;  %v237_v63 = vstv %s579_s24  ;;  %v208_v1 = vmul.f32 %v207_v53, %v619_v46  ;;  %s670_s15 = sld [smem:[#allocation8 + $0x185]] }
  0x35   :  { %v201_v0 = vadd.f32 %v200_v48, %v197_v56  ;;  %v211_v2 = vstv %s560_s5  ;;  %v234_v3 = vmul.f32 %v233_v59, %v608_v40  ;;  %v238_v6 = vmul.f32 %v237_v63, %v614_v43  ;;  %s672_s0 = sld [smem:[#allocation9]] }
  0x36   :  { %v227_v5 = vadd.f32 %v226_v57, %v223_v61  ;;  %v241_v7 = vstv %s584_s25  ;;  %v245_v9 = vstv %s588_s26  ;;  %v252_v11 = vstv %s594_s27  ;;  %s678_s16 = sld [smem:[#allocation8 + $0x186]] }
  0x37   :  { %v205_v10 = vadd.f32 %v204_v50, %v201_v0  ;;  %v255_v12 = vstv %s599_s28  ;;  %v259_v13 = vstv %s606_s29  ;;  %v253_v4 = vmul.f32 %v252_v11, %v577_v18  ;;  %s682_s4 = sld [smem:[#allocation9 + $0x2]] }
  0x38   :  { %v231_v14 = vadd.f32 %v230_v62, %v227_v5  ;;  %v256_v15 = vmul.f32 %v255_v12, %v581_v20  ;;  %v260_v16 = vmul.f32 %v259_v13, %v590_v28  ;;  %v242_v17 = vmul.f32 %v241_v7, %v619_v46  ;;  %s688_s6 = sld [smem:[#allocation8 + $0x187]] }
  0x39   :  { %v263_v19 = vstv %s612_s30  ;;  %v267_v21 = vstv %s617_s8  ;;  %v271_v25 = vstv %s623_s9  ;;  %v209_v26 = vadd.f32 %v208_v1, %v205_v10  ;;  %s378_s17 = sld [smem:[#allocation9 + $0x3]] }
  0x3a   :  { %v235_v22 = vadd.f32 %v234_v3, %v231_v14  ;;  %v257_v23 = vadd.f32 %v256_v15, %v253_v4  ;;  %v264_v24 = vmul.f32 %v263_v19, %v601_v36  ;;  %v212_v27 = vmul.f32 %v211_v2, %v641_v60 }
  0x3b   :  { %v246_v29 = vmul.f32 %v245_v9, %v641_v60  ;;  %v268_v32 = vmul.f32 %v267_v21, %v608_v40  ;;  %v275_v33 = vstv %s628_s1  ;;  %v272_v34 = vmul.f32 %v271_v25, %v614_v43 }
  0x3c   :  { %v239_v30 = vadd.f32 %v238_v6, %v235_v22  ;;  %v261_v31 = vadd.f32 %v260_v16, %v257_v23  ;;  %v279_v35 = vstv %s634_s10  ;;  %v286_v37 = vstv %s639_s11 }
  0x3d   :  { %v289_v38 = vstv %s645_s3  ;;  %v287_v42 = vmul.f32 %v286_v37, %v577_v18  ;;  %v276_v45 = vmul.f32 %v275_v33, %v619_v46  ;;  %v293_v47 = vstv %s650_s12 }
  0x3e   :  { %v243_v39 = vadd.f32 %v242_v17, %v239_v30  ;;  %v265_v41 = vadd.f32 %v264_v24, %v261_v31  ;;  %v290_v44 = vmul.f32 %v289_v38, %v581_v20  ;;  %v297_v48 = vstv %s655_s13 }
  0x3f   :  { %v301_v49 = vstv %s660_s2  ;;  %v294_v53 = vmul.f32 %v293_v47, %v590_v28  ;;  %v249_v54 = vstv %s662_s14  ;;  %v298_v55 = vmul.f32 %v297_v48, %v601_v36 }
  0x40   :  { %v247_v50 = vadd.f32 %v246_v29, %v243_v39  ;;  %v269_v51 = vadd.f32 %v268_v32, %v265_v41  ;;  %v291_v52 = vadd.f32 %v290_v44, %v287_v42  ;;  %v305_v18 = vstv %s670_s15 }
  0x41   :  { %v280_v20 = vmul.f32 %v279_v35, %v641_v60  ;;  %v302_v57 = vmul.f32 %v301_v49, %v608_v40  ;;  %v213_v58 = vadd.f32 %v212_v27, %v209_v26  ;;  %v215_v59 = vstv %s672_s0 }
  0x42   :  { %v273_v8 = vadd.f32 %v272_v34, %v269_v51  ;;  %v295_v56 = vadd.f32 %v294_v53, %v291_v52  ;;  %v309_v61 = vstv %s678_s16  ;;  %v250_v62 = vadd.f32 %v249_v54, %v247_v50 }
  0x43   :  { %v306_v28 = vmul.f32 %v305_v18, %v614_v43  ;;  %v283_v1 = vstv %s682_s4  ;;  %v313_v2 = vstv %s688_s6  ;;  %v310_v5 = vmul.f32 %v309_v61, %v619_v46 }
  0x44   :  { %v277_v63 = vadd.f32 %v276_v45, %v273_v8  ;;  %v299_v0 = vadd.f32 %v298_v55, %v295_v56  ;;  %v216_v6 = vadd.f32 %v215_v59, %v213_v58  ;;  %v314_v40 = vmul.f32 %v313_v2, %v641_v60 }
  0x45   :  { %v320_v10 = vrot.slane %v250_v62, 7  ;;  %v317_v12 = vstv %s378_s17 }
  0x46   :  { %v281_v3 = vadd.f32 %v280_v20, %v277_v63  ;;  %v303_v36 = vadd.f32 %v302_v57, %v299_v0 }
  0x47   :  { %v329_v4 = vsel %vm328_vm0, %v216_v6, %v320_v10 }
  0x48   :  { %v284_v7 = vadd.f32 %v283_v1, %v281_v3  ;;  %v307_v9 = vadd.f32 %v306_v28, %v303_v36 }
  0x4a   :  { %v311_v11 = vadd.f32 %v310_v5, %v307_v9  ;;  %v323_v13 = vrot.slane %v284_v7, 6 }
  0x4c   :  { %v315_v14 = vadd.f32 %v314_v40, %v311_v11  ;;  %v331_v15 = vsel %vm330_vm1, %v329_v4, %v323_v13 }
  0x4e   :  { %v318_v43 = vadd.f32 %v317_v12, %v315_v14 }
  0x50   :  { %v326_v16 = vrot.slane %v318_v43, 5 }
  0x52   :  { %v333_v17 = vsel %vm332_vm2, %v331_v15, %v326_v16 }
  0x53   :  { %335 = vst.msk [vmem:[%s719_s7] sm:$0xf] %vm334_vm3, %v333_v17 }
  0x54   :  { %340 = vsyncpa [#allocation5], 1 }
  0x55   :  { %341 = vsyncpa [#allocation7], 1 }
  0x56   :  { %342 = vsyncpa [#allocation10], 1 }

</bundles_post_ra>
